<compile_context>
chip_gen: v7x
topology: tpu7x:2x2x1
jax: 0.10.0
libtpu: 0.0.40
codegen_flags: <defaults>
</compile_context>

<pallas_src>
import math

import jax
import jax.numpy as jnp
from jax.experimental import pallas as pl
from jax.experimental.pallas import tpu as pltpu


# ----------------------------------------------------------------------------
# Fused kernel:  (GCN for all timesteps) -> (temporal conv) -> bias -> LeakyReLU
# ----------------------------------------------------------------------------
def fused_kernel(a_ref, x_ref, wbd_ref, gb_ref, tw_ref, tb_ref, o_ref):
    # a_ref  : [TILE_N, N_pad]    bf16   row tile of the normalized dense adjacency
    # x_ref  : [N_pad, W*Cin]     bf16   node features, time flattened into the lane dim
    # wbd_ref: [W*Cin, W*Cint]    bf16   block-diagonal per-timestep GCN weights
    # gb_ref : [1, W*Cint]        f32    per-timestep GCN biases (flattened)
    # tw_ref : [W*Cint, W*Cout]   bf16   temporal Conv1d as one matrix (padding folded in)
    # tb_ref : [1, W*Cout]        f32    Conv1d bias (tiled over timesteps)
    # o_ref  : [TILE_N, W*Cout]   f32
    #
    # NOTE: XW is (cheaply) recomputed per row tile so the N grid axis stays "parallel"
    # (no cross-step scratch dependence) — the recompute is O(W*Cin / TILE_N) of the main matmul.
    xw = jnp.dot(x_ref[...], wbd_ref[...], preferred_element_type=jnp.float32)          # [N_pad, W*Cint]
    h = jnp.dot(a_ref[...], xw.astype(jnp.bfloat16), preferred_element_type=jnp.float32)
    h = h + gb_ref[...]                                                                  # [TILE_N, W*Cint]
    out = jnp.dot(h.astype(jnp.bfloat16), tw_ref[...], preferred_element_type=jnp.float32)
    out = out + tb_ref[...]                                                              # [TILE_N, W*Cout]
    # LeakyReLU (negative_slope=0.01); dropout(p=0 / eval) is identity.
    o_ref[...] = jnp.where(out > 0.0, out, 0.01 * out).astype(o_ref.dtype)


def _round_up(x, m):
    return ((x + m - 1) // m) * m


def _choose_tiling(n):
    # Single tile for small graphs; 256-row tiles (parallel grid axis) for larger ones.
    if n <= 256:
        n_pad = _round_up(max(n, 8), 8)
        return n_pad, n_pad
    tile = 256
    return _round_up(n, tile), tile


def _vmem_limit_bytes(tile_n, n_pad, wcin, wcint, wcout):
    est = (2 * tile_n * n_pad * 2          # A tile, double buffered (bf16)
           + 2 * n_pad * wcin * 2          # resident X
           + 2 * (wcin * wcint + wcint * wcout) * 2 + (wcint + wcout) * 4
           + 2 * tile_n * wcout * 4        # output tile, double buffered
           + (n_pad * wcint + tile_n * wcint + tile_n * wcout) * 4)  # in-kernel intermediates
    return int(min(max(2 * est, 8 << 20), 64 << 20))


def fused_forward(a_hat_bf16, x_flat_bf16, wbd, gb, tw, tb, *, tile_n):
    n_pad = a_hat_bf16.shape[0]
    wcin = x_flat_bf16.shape[1]
    wcint = wbd.shape[1]
    wcout = tw.shape[1]
    return pl.pallas_call(
        fused_kernel,
        out_shape=jax.ShapeDtypeStruct((n_pad, wcout), jnp.float32),
        grid=(n_pad // tile_n,),
        in_specs=[
            pl.BlockSpec((tile_n, n_pad), lambda i: (i, 0)),   # A_hat row tile
            pl.BlockSpec((n_pad, wcin), lambda i: (0, 0)),     # X (resident)
            pl.BlockSpec((wcin, wcint), lambda i: (0, 0)),     # block-diag GCN weights (resident)
            pl.BlockSpec((1, wcint), lambda i: (0, 0)),        # GCN biases (resident)
            pl.BlockSpec((wcint, wcout), lambda i: (0, 0)),    # temporal-conv matrix (resident)
            pl.BlockSpec((1, wcout), lambda i: (0, 0)),        # conv bias (resident)
        ],
        out_specs=pl.BlockSpec((tile_n, wcout), lambda i: (i, 0)),
        compiler_params=pltpu.CompilerParams(
            dimension_semantics=("parallel",),
            vmem_limit_bytes=_vmem_limit_bytes(tile_n, n_pad, wcin, wcint, wcout),
        ),
    )(a_hat_bf16, x_flat_bf16, wbd, gb, tw, tb)


# ----------------------------------------------------------------------------
# Glue (plain JAX): dense normalized adjacency from edge_index / edge_weight
# ----------------------------------------------------------------------------
def build_norm_adj(edge_index, edge_weight, num_nodes):
    row, col = edge_index[0], edge_index[1]                       # source, target
    dense = jnp.zeros((num_nodes, num_nodes), jnp.float32).at[col, row].add(edge_weight)
    deg = dense.sum(axis=1)                                       # incoming-weight degree
    dinv = jnp.where(deg > 0, jax.lax.rsqrt(deg), 0.0)
    return dinv[:, None] * dense * dinv[None, :]


class SimpleBlockMultiGraphPallas:
    def __init__(self, key, window_size, in_channels=1, intermediate_dim=1,
                 out_channels=1, conv_kernel=3, conv_dilation=1, dropout=0.0):
        self.window_size = window_size
        self.in_channels = in_channels
        self.inter_dim = intermediate_dim
        self.out_channels = out_channels
        self.conv_kernel = conv_kernel
        self.conv_dilation = conv_dilation
        self.padding = (conv_kernel // 2) * conv_dilation
        out_len = window_size + 2 * self.padding - conv_dilation * (conv_kernel - 1)
        if out_len != window_size:
            # TODO(synk): even conv_kernel changes Conv1d output length (W+dil); not supported here.
            raise ValueError("only odd conv_kernel (output length == window_size) is supported")
        # TODO(synk): dropout(p=0) / eval mode is identity here; no RNG mask is applied.

        W, Cin, Cint, Cout, K = window_size, in_channels, intermediate_dim, out_channels, conv_kernel
        k1, k2, k3 = jax.random.split(key, 3)
        # Per-timestep GCNConv linear weights (glorot-ish) and biases (zeros, as in PyG).
        self.gcn_w = (jax.random.normal(k1, (W, Cin, Cint), jnp.float32) / math.sqrt(Cin))
        self.gcn_b = jnp.zeros((W, Cint), jnp.float32)
        # Conv1d weight in PyTorch layout [Cout, Cint, K]; bias [Cout].
        fan_in = Cint * K
        self.conv_w_pt = (jax.random.normal(k2, (Cout, Cint, K), jnp.float32) / math.sqrt(fan_in))
        self.conv_b = jax.random.normal(k3, (Cout,), jnp.float32) * 0.01

        # ---- kernel-friendly fused operands -------------------------------------------------
        # Block-diagonal per-timestep GCN weight: [W*Cin, W*Cint].
        wbd = jnp.zeros((W * Cin, W * Cint), jnp.float32)
        for w in range(W):
            wbd = wbd.at[w * Cin:(w + 1) * Cin, w * Cint:(w + 1) * Cint].set(self.gcn_w[w])
        self.wbd_bf16 = wbd.astype(jnp.bfloat16)
        self.gcn_b_flat = self.gcn_b.reshape(1, W * Cint)                       # f32

        # Temporal Conv1d unrolled into a single [W*Cint, W*Cout] matrix; zero padding is
        # handled by simply omitting out-of-range taps.
        T = jnp.zeros((W * Cint, W * Cout), jnp.float32)
        for t in range(W):
            for k in range(K):
                win = t + k * conv_dilation - self.padding
                if 0 <= win < W:
                    T = T.at[win * Cint:(win + 1) * Cint,
                             t * Cout:(t + 1) * Cout].set(self.conv_w_pt[:, :, k].T)
        self.tconv_bf16 = T.astype(jnp.bfloat16)
        self.conv_b_flat = jnp.tile(self.conv_b, W).reshape(1, W * Cout)        # f32

    def forward(self, x_list, A, E):
        N = x_list[0].shape[0]
        W, Cin, Cout = self.window_size, self.in_channels, self.out_channels

        a_hat = build_norm_adj(A, E, N)                                         # [N, N] f32
        x = jnp.stack(x_list, axis=0).astype(jnp.float32)                       # [W, N, Cin]
        x_flat = jnp.transpose(x, (1, 0, 2)).reshape(N, W * Cin)                # [N, W*Cin]

        n_pad, tile_n = _choose_tiling(N)
        a_pad = jnp.zeros((n_pad, n_pad), jnp.float32).at[:N, :N].set(a_hat)
        x_pad = jnp.zeros((n_pad, W * Cin), jnp.float32).at[:N].set(x_flat)

        out_flat = fused_forward(a_pad.astype(jnp.bfloat16),
                                 x_pad.astype(jnp.bfloat16),
                                 self.wbd_bf16, self.gcn_b_flat,
                                 self.tconv_bf16, self.conv_b_flat,
                                 tile_n=tile_n)                                 # [n_pad, W*Cout]
        out3 = out_flat[:N].reshape(N, W, Cout)                                 # single contiguous result
        # Keep the original module's list-of-[N, Cout] return contract.
        return [out3[:, i, :] for i in range(W)]


# ----------------------------------------------------------------------------
# References (correctness checks only)
# ----------------------------------------------------------------------------
def reference_same_precision(model, x_list, A, E):
    """Mirrors the fused kernel math (bf16 MXU operands, f32 accumulation) in plain XLA."""
    N = x_list[0].shape[0]
    W, Cin, Cout = model.window_size, model.in_channels, model.out_channels
    a_hat = build_norm_adj(A, E, N).astype(jnp.bfloat16)
    x = jnp.stack(x_list, axis=0).astype(jnp.float32)
    x_flat = jnp.transpose(x, (1, 0, 2)).reshape(N, W * Cin).astype(jnp.bfloat16)
    xw = jnp.dot(x_flat, model.wbd_bf16, preferred_element_type=jnp.float32)
    h = jnp.dot(a_hat, xw.astype(jnp.bfloat16), preferred_element_type=jnp.float32) + model.gcn_b_flat
    out = jnp.dot(h.astype(jnp.bfloat16), model.tconv_bf16,
                  preferred_element_type=jnp.float32) + model.conv_b_flat
    out = jnp.where(out > 0.0, out, 0.01 * out)
    return out.reshape(N, W, Cout)


def reference_f32(model, x_list, A, E):
    """Independent f32, per-timestep / per-tap reference matching the PyTorch module."""
    N = x_list[0].shape[0]
    W, K, dil, p = model.window_size, model.conv_kernel, model.conv_dilation, model.padding
    a_hat = build_norm_adj(A, E, N)
    hs = [a_hat @ (x_list[w].astype(jnp.float32) @ model.gcn_w[w]) + model.gcn_b[w]
          for w in range(W)]
    H = jnp.stack(hs, axis=1)                                                   # [N, W, Cint]
    Hp = jnp.pad(H, ((0, 0), (p, p), (0, 0)))
    acc = jnp.zeros((N, W, model.out_channels), jnp.float32)
    for k in range(K):
        seg = Hp[:, k * dil: k * dil + W, :]
        acc = acc + jnp.einsum("nwc,co->nwo", seg, model.conv_w_pt[:, :, k].T)
    acc = acc + model.conv_b[None, None, :]
    return jnp.where(acc > 0.0, acc, 0.01 * acc)


if __name__ == "__main__":
    # Small, deterministic problem.
    window_size = 8
    num_nodes = 16
    in_channels = 4
    inter_dim = 8
    out_channels = 4
    num_edges = 40

    key = jax.random.PRNGKey(0)
    k_model, k_x, k_a, k_e = jax.random.split(key, 4)

    model = SimpleBlockMultiGraphPallas(k_model, window_size, in_channels,
                                        inter_dim, out_channels,
                                        conv_kernel=3, conv_dilation=1, dropout=0.0)

    x_all = jax.random.normal(k_x, (window_size, num_nodes, in_channels), jnp.float32)
    x_list = [x_all[i] for i in range(window_size)]
    A = jax.random.randint(k_a, (2, num_edges), 0, num_nodes, dtype=jnp.int32)  # edge_index
    E = jax.random.uniform(k_e, (num_edges,), jnp.float32, 0.1, 1.0)            # edge_weight

    out_list = model.forward(x_list, A, E)
    out_list = [jax.block_until_ready(o) for o in out_list]

    ref_same = reference_same_precision(model, x_list, A, E)                    # same-precision check
    ref_f32 = reference_f32(model, x_list, A, E)                                # semantic (f32) check
    for i, o in enumerate(out_list):
        assert o.shape == (num_nodes, out_channels)
        assert jnp.allclose(o, ref_same[:, i, :], atol=1e-3, rtol=1e-3), "mismatch vs fused XLA reference"
        assert jnp.allclose(o, ref_f32[:, i, :], atol=8e-2, rtol=8e-2), "mismatch vs f32 PyTorch-style reference"

    print("KERNEL_OK")
</pallas_src>

<mosaic_0001>
module attributes {stable_mosaic.version = 11 : i64} {
  func.func @fused_kernel(%arg0: i32, %arg1: memref<16x16xbf16, #tpu.memory_space<vmem>>, %arg2: memref<16x32xbf16, #tpu.memory_space<vmem>>, %arg3: memref<32x64xbf16, #tpu.memory_space<vmem>>, %arg4: memref<1x64xf32, #tpu.memory_space<vmem>>, %arg5: memref<64x32xbf16, #tpu.memory_space<vmem>>, %arg6: memref<1x32xf32, #tpu.memory_space<vmem>>, %arg7: memref<16x32xf32, #tpu.memory_space<vmem>>) attributes {dimension_semantics = [#tpu.dimension_semantics<parallel>], iteration_bounds = array<i64: 1>, scalar_prefetch = 0 : i64, scratch_operands = 0 : i64, tpu.core_type = #tpu.core_type<tc>, window_params = [{transform_indices = @transform_0, window_bounds = array<i64: 16, 16>}, {pipeline_mode = #tpu.pipeline_mode<synchronous>, transform_indices = @transform_1, window_bounds = array<i64: 16, 32>}, {pipeline_mode = #tpu.pipeline_mode<synchronous>, transform_indices = @transform_2, window_bounds = array<i64: 32, 64>}, {pipeline_mode = #tpu.pipeline_mode<synchronous>, transform_indices = @transform_3, window_bounds = array<i64: 1, 64>}, {pipeline_mode = #tpu.pipeline_mode<synchronous>, transform_indices = @transform_4, window_bounds = array<i64: 64, 32>}, {pipeline_mode = #tpu.pipeline_mode<synchronous>, transform_indices = @transform_5, window_bounds = array<i64: 1, 32>}, {transform_indices = @transform_6, window_bounds = array<i64: 16, 32>}]} {
    %c0 = arith.constant 0 : index
    %c0_0 = arith.constant 0 : index
    %0 = vector.load %arg2[%c0, %c0_0] : memref<16x32xbf16, #tpu.memory_space<vmem>>, vector<16x32xbf16>
    %c0_1 = arith.constant 0 : index
    %c0_2 = arith.constant 0 : index
    %1 = vector.load %arg3[%c0_1, %c0_2] : memref<32x64xbf16, #tpu.memory_space<vmem>>, vector<32x64xbf16>
    %cst = arith.constant dense<0.000000e+00> : vector<16x64xf32>
    %2 = tpu.matmul %0, %1, %cst {dimension_numbers = #tpu.dot_dimension_numbers<[1], [0], [0], [1], [0, 0, 1, 1], [], []>} : vector<16x32xbf16>, vector<32x64xbf16>, vector<16x64xf32> -> vector<16x64xf32>
    %c0_3 = arith.constant 0 : index
    %c0_4 = arith.constant 0 : index
    %3 = vector.load %arg1[%c0_3, %c0_4] : memref<16x16xbf16, #tpu.memory_space<vmem>>, vector<16x16xbf16>
    %4 = arith.truncf %2 : vector<16x64xf32> to vector<16x64xbf16>
    %cst_5 = arith.constant dense<0.000000e+00> : vector<16x64xf32>
    %5 = tpu.matmul %3, %4, %cst_5 {dimension_numbers = #tpu.dot_dimension_numbers<[1], [0], [0], [1], [0, 0, 1, 1], [], []>} : vector<16x16xbf16>, vector<16x64xbf16>, vector<16x64xf32> -> vector<16x64xf32>
    %c0_6 = arith.constant 0 : index
    %c0_7 = arith.constant 0 : index
    %6 = vector.load %arg4[%c0_6, %c0_7] : memref<1x64xf32, #tpu.memory_space<vmem>>, vector<1x64xf32>
    %7 = vector.broadcast %6 : vector<1x64xf32> to vector<16x64xf32>
    %8 = arith.addf %5, %7 : vector<16x64xf32>
    %9 = arith.truncf %8 : vector<16x64xf32> to vector<16x64xbf16>
    %c0_8 = arith.constant 0 : index
    %c0_9 = arith.constant 0 : index
    %10 = vector.load %arg5[%c0_8, %c0_9] : memref<64x32xbf16, #tpu.memory_space<vmem>>, vector<64x32xbf16>
    %cst_10 = arith.constant dense<0.000000e+00> : vector<16x32xf32>
    %11 = tpu.matmul %9, %10, %cst_10 {dimension_numbers = #tpu.dot_dimension_numbers<[1], [0], [0], [1], [0, 0, 1, 1], [], []>} : vector<16x64xbf16>, vector<64x32xbf16>, vector<16x32xf32> -> vector<16x32xf32>
    %c0_11 = arith.constant 0 : index
    %c0_12 = arith.constant 0 : index
    %12 = vector.load %arg6[%c0_11, %c0_12] : memref<1x32xf32, #tpu.memory_space<vmem>>, vector<1x32xf32>
    %13 = vector.broadcast %12 : vector<1x32xf32> to vector<16x32xf32>
    %14 = arith.addf %11, %13 : vector<16x32xf32>
    %cst_13 = arith.constant 0.000000e+00 : f32
    %15 = vector.broadcast %cst_13 : f32 to vector<16x32xf32>
    %16 = arith.cmpf ogt, %14, %15 : vector<16x32xf32>
    %cst_14 = arith.constant 0.00999999977 : f32
    %17 = vector.broadcast %cst_14 : f32 to vector<16x32xf32>
    %18 = arith.mulf %17, %14 : vector<16x32xf32>
    %19 = arith.select %16, %14, %18 : vector<16x32xi1>, vector<16x32xf32>
    %c0_15 = arith.constant 0 : index
    %c0_16 = arith.constant 0 : index
    %20 = vector.load %arg7[%c0_15, %c0_16] : memref<16x32xf32, #tpu.memory_space<vmem>>, vector<16x32xf32>
    tpu.vector_store %arg7[%c0_15, %c0_16], %19 {strides = array<i32>} : memref<16x32xf32, #tpu.memory_space<vmem>>, vector<16x32xf32>,
    return
  }
  func.func @transform_0(%arg0: i32) -> (i32, i32) {
    %c0_i32 = arith.constant 0 : i32
    %c0_i32_0 = arith.constant 0 : i32
    return %arg0, %c0_i32 : i32, i32
  }
  func.func @transform_1(%arg0: i32) -> (i32, i32) {
    %c0_i32 = arith.constant 0 : i32
    %c0_i32_0 = arith.constant 0 : i32
    %c0_i32_1 = arith.constant 0 : i32
    return %c0_i32, %c0_i32_0 : i32, i32
  }
  func.func @transform_2(%arg0: i32) -> (i32, i32) {
    %c0_i32 = arith.constant 0 : i32
    %c0_i32_0 = arith.constant 0 : i32
    %c0_i32_1 = arith.constant 0 : i32
    return %c0_i32, %c0_i32_0 : i32, i32
  }
  func.func @transform_3(%arg0: i32) -> (i32, i32) {
    %c0_i32 = arith.constant 0 : i32
    %c0_i32_0 = arith.constant 0 : i32
    %c0_i32_1 = arith.constant 0 : i32
    return %c0_i32, %c0_i32_0 : i32, i32
  }
  func.func @transform_4(%arg0: i32) -> (i32, i32) {
    %c0_i32 = arith.constant 0 : i32
    %c0_i32_0 = arith.constant 0 : i32
    %c0_i32_1 = arith.constant 0 : i32
    return %c0_i32, %c0_i32_0 : i32, i32
  }
  func.func @transform_5(%arg0: i32) -> (i32, i32) {
    %c0_i32 = arith.constant 0 : i32
    %c0_i32_0 = arith.constant 0 : i32
    %c0_i32_1 = arith.constant 0 : i32
    return %c0_i32, %c0_i32_0 : i32, i32
  }
  func.func @transform_6(%arg0: i32) -> (i32, i32) {
    %c0_i32 = arith.constant 0 : i32
    %c0_i32_0 = arith.constant 0 : i32
    return %arg0, %c0_i32 : i32, i32
  }
}

</mosaic_0001>

<bundles_post_ra>
// kernel: tpu_custom_call.1
= control target key start
LH: loop header
LB: loop body
LE: loop exit
PB: predicated region body
PF: predicated region fallthrough
CT: control target
= control target key end

     0   :  { %v348_v1 = vmov 0.0   ;;  %vm349_vm0 = vmmov 0   ;;  %vm48_vm1 = vcmask 261120   ;;  %s433_s0 = inlined_call_operand.vmem [shape: bf16[16,16], index: 0, kind: input, shape index: {}]   ;;  %s434_s1 = inlined_call_operand.vmem [shape: bf16[16,32], index: 1, kind: input, shape index: {}]   ;;  %s435_s2 = inlined_call_operand.vmem [shape: bf16[32,64], index: 2, kind: input, shape index: {}]   ;;  %s436_s3 = inlined_call_operand.vmem [shape: f32[1,64], index: 3, kind: input, shape index: {}]   ;;  %s437_s4 = inlined_call_operand.vmem [shape: bf16[64,32], index: 4, kind: input, shape index: {}]   ;;  %s438_s5 = inlined_call_operand.vmem [shape: f32[1,32], index: 5, kind: input, shape index: {}]   ;;  %s439_s6 = inlined_call_operand.hbm [shape: f32[16,32], index: 6, kind: output, shape index: {}]  }
   0x1   :  { %v316_v0 = vld [vmem:[%s435_s2] sm:$0xff]   ;;  %285 = vmatprep.subr.bf16.mxu0 %v348_v1  ;;  %299 = vmatprep.subr.bf16.mxu1 %v348_v1  ;;  %v317_v2 = vld [vmem:[%s435_s2 + $0x8] sm:$0xff]  }
   0x2   :  { %286 = vmatpush3.bf16.msra.mxu0 %v316_v0  ;;  %289 = vmatprep.mubr.msk.bf16.mxu0 %vm349_vm0, %v348_v1  ;;  %v318_v3 = vld [vmem:[%s434_s1] sm:$0xff]  }
   0x3   :  { %287 = vmatprep.subr.bf16.mxu0 %v348_v1  ;;  %307 = vmatprep.mubr.msk.bf16.mxu1 %vm349_vm0, %v348_v1 }
   0x6   :  { %288 = vmatpush3.bf16.msra.mxu0 %v317_v2 }
   0x7   :  { %11 = vsyncpa [#allocation3], 0  ;;  %293 = vmatprep.subr.bf16.mxu0 %v348_v1  ;;  %v320_v4 = vld [vmem:[%s437_s4] sm:$0xff]   ;;  %v321_v5 = vld [vmem:[%s437_s4 + $0x8] sm:$0xff]   ;;  %vm108_vm2 = vcmask 130048   ;;  %vm193_vm3 = vcmask 523264  }
   0x8   :  { %300 = vmatpush3.bf16.msra.mxu1 %v320_v4  ;;  %v319_v11 = vld [vmem:[%s433_s0] sm:$0xff]   ;;  %v322_v12 = vld [vmem:[%s437_s4 + $0x10] sm:$0xff]   ;;  %v323_v13 = vld [vmem:[%s437_s4 + $0x18] sm:$0xff]   ;;  %s350_s4 = smov [#allocation2]  }
   0x9   :  { %290 = vmatmul.mubr.msk.bf16.vlgmr.msra.gmra.mrb[0].mxu0 %vm48_vm1, %v318_v3  ;;  %301 = vmatprep.subr.bf16.mxu1 %v348_v1  ;;  %v266_v14 = vld [vmem:[%s436_s3] ss:$0 sm:$0xff]  ;;  %s251_s14 = sshll.u32 %s350_s4, 4  ;;  %s252_s14 = int_to_ptr.vmem [resolvable:$true] %s251_s14 }
   0xa   :  { %295 = vmatprep.mubr.msk.bf16.mxu0 %vm349_vm0, %v348_v1  ;;  %v269_v22 = vld [vmem:[%s438_s5] ss:$0 sm:$0xff]  ;;  %s324_s3 = scalar_lea.vmem %s252_s14, 256  ;;  %p329_p1 = scmp.lt.s32.totalorder %s252_s14, %s252_s14 }
   0xb   :  { %p325_p0 = scmp.ne.s32.totalorder %s252_s14, %s324_s3  ;;  %p330_p2 = scmp.lt.s32.totalorder %s324_s3, %s324_s3 }
   0xc   :  { %302 = vmatpush3.bf16.msra.mxu1 %v321_v5 }
   0xd   :  { %303 = vmatprep.subr.bf16.mxu1 %v348_v1  ;;  %p331_p3 = por %p330_p2, %p329_p1 }
   0xf   :  { %p332_p4 = pnand %p331_p3, %p325_p0 }
  0x10   :  { %304 = vmatpush3.bf16.msra.mxu1 %v322_v12 }
  0x11   :  { %305 = vmatprep.subr.bf16.mxu1 %v348_v1 }
  0x14   :  { %306 = vmatpush3.bf16.msra.mxu1 %v323_v13 }
  0xdc   :  { %v86_v6 = vpop.f32.mrb[0].mxu0 }
  0xdd   :  { %v291_v7 = vpop.f32.mrb[1].mxu0 }
  0xde   :  { %v89_v8 = vpop.f32.mrb[2].mxu0 }
  0xdf   :  { %v95_v9 = vpack.c.bf16 %v89_v8, %v86_v6  ;;  %v292_v10 = vpop.f32.mrb[3].mxu0 }
  0xe1   :  { %294 = vmatpush3.bf16.msra.mxu0 %v95_v9 }
  0xe4   :  { %296 = vmatmul.mubr.msk.bf16.vlgmr.msra.gmra.mrb[4].mxu0 %vm108_vm2, %v319_v11 }
 0x1b7   :  { %v146_v15 = vpop.f32.mrb[4].mxu0 }
 0x1b8   :  { %v297_v16 = vpop.f32.mrb[5].mxu0  ;;  %v147_v18 = vadd.f32 %v266_v14, %v146_v15 }
 0x1b9   :  { %v149_v17 = vpop.f32.mrb[6].mxu0 }
 0x1ba   :  { %v150_v19 = vadd.f32 %v266_v14, %v149_v17  ;;  %v298_v20 = vpop.f32.mrb[7].mxu0 }
 0x1bc   :  { %v153_v21 = vpack.c.bf16 %v150_v19, %v147_v18 }
 0x1be   :  { %308 = vmatmul.mubr.msk.bf16.vlgmr.msra.gmra.mrb[0].mxu1 %vm193_vm3, %v153_v21 }
 0x291   :  { %v231_v23 = vpop.f32.mrb[0].mxu1 }
 0x292   :  { %v232_v24 = vadd.f32 %v269_v22, %v231_v23  ;;  %v309_v25 = vpop.f32.mrb[1].mxu1 }
 0x293   :  { %v234_v26 = vpop.f32.mrb[2].mxu1 }
 0x294   :  { %vm238_vm4 = vcmp.gt.f32.partialorder %v232_v24, 0.0  ;;  %v240_v27 = vmul.f32 0.01, %v232_v24  ;;  %v235_v28 = vadd.f32 %v269_v22, %v234_v26  ;;  %v310_v29 = vpop.f32.mrb[3].mxu1 }
 0x296   :  { %v242_v30 = vsel %vm238_vm4, %v232_v24, %v240_v27  ;;  %vm239_vm5 = vcmp.gt.f32.partialorder %v235_v28, 0.0  ;;  %v241_v31 = vmul.f32 0.01, %v235_v28 }
 0x297   :  { %244 = vst.msk [vmem:[#allocation2] sm:$0xff] %vm48_vm1, %v242_v30 }
 0x298   :  { %v243_v32 = vsel %vm239_vm5, %v235_v28, %v241_v31 }
 0x299   :  { %245 = vst.msk [vmem:[#allocation2 + $0x8] sm:$0xff] %vm48_vm1, %v243_v32 }
 0x29a   :  { %335 = shalt.err (!%p332_p4)
}
 0x29b   :  { %s336_s16 = scalar_lea.hbm %s439_s6, 256 }
 0x29c   :  { %p337_p5 = scmp.ne.s32.totalorder %s439_s6, %s336_s16  ;;  %p340_p6 = scmp.lt.u32.totalorder %s336_s16, %s439_s6 }
 0x29e   :  { %p342_p7 = pnand %p340_p6, %p337_p5 }
 0x2a0   :  { %345 = shalt.err (!%p342_p7)
}
 0x2a1   :  { %s351_s21 = smov 128   ;;  %s352_s22 = smov 8  }
 0x2a2   :  { %257 = dma.vmem_to_hbm [thread:$0]  %s252_s14, 256, %s439_s6, [#allocation3], %s351_s21, %s351_s21, %s352_s22  }
 0x2a3   :  { %346 = dma.done.wait [#allocation3], 256  }
 0x2a4   :  { %347 = vsyncadd [#allocation3], 4294967040 }
 0x2a5   :  { %261 = vsyncpa [#allocation3], 1 }

</bundles_post_ra>
